<compile_context>
chip_gen: v5e
topology: v5e:2x2
jax: 0.10.0
libtpu: 0.0.40
codegen_flags: <defaults>
</compile_context>

<pallas_src>
import functools

import jax
import jax.numpy as jnp
import numpy as np
from jax.experimental import pallas as pl
from jax.experimental.pallas import tpu as pltpu


# --------------------------------------------------------------------------- #
# Kernel: entire forward pass for one batch element.
# --------------------------------------------------------------------------- #
def sum_attention_kernel(radar_ref, imgs_ref, w_rad_ref, w_img_ref, wrec_ref,
                         bias_ref, out_ref, *, c_m, c_n, in_c, hw_valid):
    hw_pad = radar_ref.shape[-1]                 # static

    radar = radar_ref[...]                       # (c_m, HWp) bf16
    imgs = imgs_ref[...]                         # (c_n, HWp) bf16
    bias = bias_ref[...]                         # (2c_m + 2c_n + in_c, 1) f32
    b_rad = bias[:2 * c_m, :]                    # [bq; br]
    b_img = bias[2 * c_m:2 * (c_m + c_n), :]     # [bk; bc]
    b_rec = bias[2 * (c_m + c_n):, :]            # brec

    # Fused 1x1 convs (bf16 operands, f32 accumulation on the MXU).
    QR = jnp.dot(w_rad_ref[...], radar, preferred_element_type=jnp.float32) + b_rad
    KC = jnp.dot(w_img_ref[...], imgs, preferred_element_type=jnp.float32) + b_img
    Q, R = QR[:c_m, :], QR[c_m:, :]              # (c_m, HWp) each, f32
    K, C = KC[:c_n, :], KC[c_n:, :]              # (c_n, HWp) each, f32

    if hw_valid != hw_pad:                       # static branch: only if lanes were padded
        lane = jax.lax.broadcasted_iota(jnp.int32, K.shape, 1)
        K = jnp.where(lane < hw_valid, K, 0.0)   # padded lanes contribute nothing to G

    # global_descriptors = Q @ K^T  (f32; softmax stays f32)
    G = jax.lax.dot_general(Q, K, (((1,), (1,)), ((), ())),
                            preferred_element_type=jnp.float32)        # (c_m, c_n)

    gC = jnp.exp(G - jnp.max(G, axis=0, keepdims=True))
    gC = gC / jnp.sum(gC, axis=0, keepdims=True)                        # softmax over c_m
    gR = jnp.exp(G - jnp.max(G, axis=1, keepdims=True))
    gR = gR / jnp.sum(gR, axis=1, keepdims=True)                        # softmax over c_n
    # (no transpose: the dim-1/dim-1 contraction below absorbs it)

    # Reassociated reconstruct: tiny (in_c, c) matrices first, then two (*, HW) matmuls.
    wrec = wrec_ref[...]                                                # (in_c, c_m+c_n) f32
    A1 = jnp.dot(wrec[:, :c_m], gC, preferred_element_type=jnp.float32)       # (in_c, c_n)
    A2 = jax.lax.dot_general(wrec[:, c_m:], gR, (((1,), (1,)), ((), ())),
                             preferred_element_type=jnp.float32)              # (in_c, c_m)

    out = (jnp.dot(A1, C, preferred_element_type=jnp.float32)
           + jnp.dot(A2, R, preferred_element_type=jnp.float32)
           + b_rec)
    out_ref[...] = out.astype(out_ref.dtype)


# --------------------------------------------------------------------------- #
# Wrapper
# --------------------------------------------------------------------------- #
def sum_attention(radar, imgs, params):
    B, c_m, H, W = radar.shape
    c_n = imgs.shape[1]
    in_c = params["wrec"].shape[0]
    HW = H * W
    HW_pad = ((HW + 127) // 128) * 128           # lane-dense output / unmasked stores

    radar2 = radar.reshape(B, c_m, HW)
    imgs2 = imgs.reshape(B, c_n, HW)
    if HW_pad != HW:
        radar2 = jnp.pad(radar2, ((0, 0), (0, 0), (0, HW_pad - HW)))
        imgs2 = jnp.pad(imgs2, ((0, 0), (0, 0), (0, HW_pad - HW)))
    radar2 = radar2.astype(jnp.bfloat16)
    imgs2 = imgs2.astype(jnp.bfloat16)

    # Fuse the paired 1x1-conv weights; stack every bias into a single vector.
    w_rad = jnp.concatenate([params["wq"], params["wr"]], axis=0).astype(jnp.bfloat16)
    w_img = jnp.concatenate([params["wk"], params["wc"]], axis=0).astype(jnp.bfloat16)
    wrec = params["wrec"].astype(jnp.float32)     # only touches tiny matmuls -> keep f32
    bias = jnp.concatenate([params["bq"], params["br"],
                            params["bk"], params["bc"],
                            params["brec"]], axis=0).astype(jnp.float32)

    kernel = functools.partial(sum_attention_kernel,
                               c_m=c_m, c_n=c_n, in_c=in_c, hw_valid=HW)

    per_batch = lambda b: (b, 0, 0)               # per-batch slab
    whole = lambda b: (0, 0)                      # weights/biases resident every step

    out = pl.pallas_call(
        kernel,
        out_shape=jax.ShapeDtypeStruct((B, in_c, HW_pad), jnp.float32),
        grid_spec=pltpu.PrefetchScalarGridSpec(
            num_scalar_prefetch=0,
            grid=(B,),
            in_specs=[
                pl.BlockSpec((None, c_m, HW_pad), per_batch),       # radar (bf16)
                pl.BlockSpec((None, c_n, HW_pad), per_batch),       # imgs  (bf16)
                pl.BlockSpec((2 * c_m, c_m), whole),                # [wq; wr]
                pl.BlockSpec((2 * c_n, c_n), whole),                # [wk; wc]
                pl.BlockSpec((in_c, c_m + c_n), whole),             # wrec
                pl.BlockSpec((2 * (c_m + c_n) + in_c, 1), whole),   # stacked biases
            ],
            out_specs=pl.BlockSpec((None, in_c, HW_pad), per_batch),
        ),
        compiler_params=pltpu.CompilerParams(
            dimension_semantics=("parallel",),
            vmem_limit_bytes=48 * 1024 * 1024),
    )(radar2, imgs2, w_rad, w_img, wrec, bias)

    if HW_pad != HW:
        out = out[:, :, :HW]
    return out.reshape(B, in_c, H, W)


# --------------------------------------------------------------------------- #
# Deterministic parameter init (kaiming_normal_ with mode='fan_out', bias=0).
# For 1x1 convs: fan_out = out_channels, so std = sqrt(2 / out_channels).
# --------------------------------------------------------------------------- #
def init_params(key, in_channels, c_m, c_n):
    ks = jax.random.split(key, 5)

    def kaiming(k, out_c, in_c):
        std = np.sqrt(2.0 / out_c)
        return (std * jax.random.normal(k, (out_c, in_c))).astype(jnp.float32)

    return {
        "wq": kaiming(ks[0], c_m, c_m), "bq": jnp.zeros((c_m, 1), jnp.float32),
        "wk": kaiming(ks[1], c_n, c_n), "bk": jnp.zeros((c_n, 1), jnp.float32),
        "wc": kaiming(ks[2], c_n, c_n), "bc": jnp.zeros((c_n, 1), jnp.float32),
        "wr": kaiming(ks[3], c_m, c_m), "br": jnp.zeros((c_m, 1), jnp.float32),
        "wrec": kaiming(ks[4], in_channels, c_m + c_n),
        "brec": jnp.zeros((in_channels, 1), jnp.float32),
    }


# --------------------------------------------------------------------------- #
# Pure-JAX reference (mirrors the PyTorch forward, un-fused, un-reassociated).
# --------------------------------------------------------------------------- #
def reference_forward(radar, imgs, p):
    B, c_m, H, W = radar.shape
    c_n = imgs.shape[1]
    HW = H * W
    hi = jax.lax.Precision.HIGHEST

    def conv1x1(x, w, b):
        return jnp.einsum("oc,bcs->bos", w.astype(jnp.float32),
                          x.astype(jnp.float32), precision=hi) + b[None, :, :]

    radar2 = radar.reshape(B, c_m, HW).astype(jnp.float32)
    imgs2 = imgs.reshape(B, c_n, HW).astype(jnp.float32)
    Q = conv1x1(radar2, p["wq"], p["bq"])
    K = conv1x1(imgs2, p["wk"], p["bk"])
    C = conv1x1(imgs2, p["wc"], p["bc"])
    R = conv1x1(radar2, p["wr"], p["br"])

    G = jnp.einsum("bms,bns->bmn", Q, K, precision=hi)        # (B, c_m, c_n)
    gC = jax.nn.softmax(G, axis=1)                             # over c_m
    gR = jax.nn.softmax(jnp.swapaxes(G, 1, 2), axis=1)         # (B, c_n, c_m), over c_n
    Z1 = jnp.einsum("bmn,bns->bms", gC, C, precision=hi)
    Z2 = jnp.einsum("bnm,bms->bns", gR, R, precision=hi)
    Z = jnp.concatenate([Z1, Z2], axis=1)                      # (B, c_m + c_n, HW)
    out = conv1x1(Z, p["wrec"], p["brec"])
    return out.reshape(B, -1, H, W)


if __name__ == "__main__":
    B, in_channels, c_m, c_n, H, W = 2, 4, 4, 4, 16, 16

    key = jax.random.PRNGKey(0)
    k_radar, k_imgs, k_params = jax.random.split(key, 3)
    radar = jax.random.normal(k_radar, (B, c_m, H, W), dtype=jnp.float32)
    imgs = jax.random.normal(k_imgs, (B, c_n, H, W), dtype=jnp.float32)
    params = init_params(k_params, in_channels, c_m, c_n)

    out = jax.block_until_ready(sum_attention(radar, imgs, params))
    assert out.shape == (B, in_channels, H, W), out.shape

    # Verify against the PyTorch-mirroring reference, evaluated on the same
    # bf16-quantized conv inputs/weights the kernel uses (f32 everywhere else).
    q = lambda a: a.astype(jnp.bfloat16).astype(jnp.float32)
    params_q = dict(params)
    for name in ("wq", "wk", "wc", "wr"):
        params_q[name] = q(params[name])
    ref = reference_forward(q(radar), q(imgs), params_q)
    np.testing.assert_allclose(np.asarray(out), np.asarray(ref), rtol=1e-3, atol=1e-3)

    print("KERNEL_OK")
</pallas_src>

<mosaic_0001>
module attributes {stable_mosaic.version = 11 : i64} {
  func.func @sum_attention_kernel(%arg0: i32, %arg1: memref<1x4x256xbf16, #tpu.memory_space<vmem>>, %arg2: memref<1x4x256xbf16, #tpu.memory_space<vmem>>, %arg3: memref<8x4xbf16, #tpu.memory_space<vmem>>, %arg4: memref<8x4xbf16, #tpu.memory_space<vmem>>, %arg5: memref<4x8xf32, #tpu.memory_space<vmem>>, %arg6: memref<20x1xf32, #tpu.memory_space<vmem>>, %arg7: memref<1x4x256xf32, #tpu.memory_space<vmem>>) attributes {dimension_semantics = [#tpu.dimension_semantics<parallel>], iteration_bounds = array<i64: 2>, scalar_prefetch = 0 : i64, scratch_operands = 0 : i64, tpu.core_type = #tpu.core_type<tc>, window_params = [{transform_indices = @transform_0, window_bounds = array<i64: 1, 4, 256>}, {transform_indices = @transform_1, window_bounds = array<i64: 1, 4, 256>}, {pipeline_mode = #tpu.pipeline_mode<synchronous>, transform_indices = @transform_2, window_bounds = array<i64: 8, 4>}, {pipeline_mode = #tpu.pipeline_mode<synchronous>, transform_indices = @transform_3, window_bounds = array<i64: 8, 4>}, {pipeline_mode = #tpu.pipeline_mode<synchronous>, transform_indices = @transform_4, window_bounds = array<i64: 4, 8>}, {pipeline_mode = #tpu.pipeline_mode<synchronous>, transform_indices = @transform_5, window_bounds = array<i64: 20, 1>}, {transform_indices = @transform_6, window_bounds = array<i64: 1, 4, 256>}]} {
    %c0 = arith.constant 0 : index
    %c0_0 = arith.constant 0 : index
    %c0_1 = arith.constant 0 : index
    %0 = vector.load %arg1[%c0, %c0_0, %c0_1] : memref<1x4x256xbf16, #tpu.memory_space<vmem>>, vector<1x4x256xbf16>
    %1 = vector.shape_cast %0 : vector<1x4x256xbf16> to vector<4x256xbf16>
    %c0_2 = arith.constant 0 : index
    %c0_3 = arith.constant 0 : index
    %c0_4 = arith.constant 0 : index
    %2 = vector.load %arg2[%c0_2, %c0_3, %c0_4] : memref<1x4x256xbf16, #tpu.memory_space<vmem>>, vector<1x4x256xbf16>
    %3 = vector.shape_cast %2 : vector<1x4x256xbf16> to vector<4x256xbf16>
    %c0_5 = arith.constant 0 : index
    %c0_6 = arith.constant 0 : index
    %4 = vector.load %arg6[%c0_5, %c0_6] : memref<20x1xf32, #tpu.memory_space<vmem>>, vector<20x1xf32>
    %5 = vector.extract_strided_slice %4 {offsets = [0, 0], sizes = [8, 1], strides = [1, 1]} : vector<20x1xf32> to vector<8x1xf32>
    %6 = vector.extract_strided_slice %4 {offsets = [8, 0], sizes = [8, 1], strides = [1, 1]} : vector<20x1xf32> to vector<8x1xf32>
    %7 = vector.extract_strided_slice %4 {offsets = [16, 0], sizes = [4, 1], strides = [1, 1]} : vector<20x1xf32> to vector<4x1xf32>
    %c0_7 = arith.constant 0 : index
    %c0_8 = arith.constant 0 : index
    %8 = vector.load %arg3[%c0_7, %c0_8] : memref<8x4xbf16, #tpu.memory_space<vmem>>, vector<8x4xbf16>
    %cst = arith.constant dense<0.000000e+00> : vector<8x256xf32>
    %9 = tpu.matmul %8, %1, %cst {dimension_numbers = #tpu.dot_dimension_numbers<[1], [0], [0], [1], [0, 0, 1, 1], [], []>} : vector<8x4xbf16>, vector<4x256xbf16>, vector<8x256xf32> -> vector<8x256xf32>
    %10 = vector.broadcast %5 : vector<8x1xf32> to vector<8x256xf32>
    %11 = arith.addf %9, %10 : vector<8x256xf32>
    %c0_9 = arith.constant 0 : index
    %c0_10 = arith.constant 0 : index
    %12 = vector.load %arg4[%c0_9, %c0_10] : memref<8x4xbf16, #tpu.memory_space<vmem>>, vector<8x4xbf16>
    %cst_11 = arith.constant dense<0.000000e+00> : vector<8x256xf32>
    %13 = tpu.matmul %12, %3, %cst_11 {dimension_numbers = #tpu.dot_dimension_numbers<[1], [0], [0], [1], [0, 0, 1, 1], [], []>} : vector<8x4xbf16>, vector<4x256xbf16>, vector<8x256xf32> -> vector<8x256xf32>
    %14 = vector.broadcast %6 : vector<8x1xf32> to vector<8x256xf32>
    %15 = arith.addf %13, %14 : vector<8x256xf32>
    %16 = vector.extract_strided_slice %11 {offsets = [0, 0], sizes = [4, 256], strides = [1, 1]} : vector<8x256xf32> to vector<4x256xf32>
    %17 = vector.extract_strided_slice %11 {offsets = [4, 0], sizes = [4, 256], strides = [1, 1]} : vector<8x256xf32> to vector<4x256xf32>
    %18 = vector.extract_strided_slice %15 {offsets = [0, 0], sizes = [4, 256], strides = [1, 1]} : vector<8x256xf32> to vector<4x256xf32>
    %19 = vector.extract_strided_slice %15 {offsets = [4, 0], sizes = [4, 256], strides = [1, 1]} : vector<8x256xf32> to vector<4x256xf32>
    %cst_12 = arith.constant dense<0.000000e+00> : vector<4x4xf32>
    %20 = tpu.matmul %16, %18, %cst_12 {dimension_numbers = #tpu.dot_dimension_numbers<[1], [1], [0], [0], [0, 0, 1, 0], [], []>} : vector<4x256xf32>, vector<4x256xf32>, vector<4x4xf32> -> vector<4x4xf32>
    %cst_13 = arith.constant dense<0xFF800000> : vector<4xf32>
    %21 = vector.multi_reduction <maximumf>, %20, %cst_13 [0] : vector<4x4xf32> to vector<4xf32>
    %22 = vector.shape_cast %21 : vector<4xf32> to vector<1x4xf32>
    %23 = vector.broadcast %22 : vector<1x4xf32> to vector<4x4xf32>
    %24 = arith.subf %20, %23 : vector<4x4xf32>
    %25 = math.exp %24 : vector<4x4xf32>
    %cst_14 = arith.constant dense<0.000000e+00> : vector<4xf32>
    %26 = vector.multi_reduction <add>, %25, %cst_14 [0] : vector<4x4xf32> to vector<4xf32>
    %27 = vector.shape_cast %26 : vector<4xf32> to vector<1x4xf32>
    %28 = vector.broadcast %27 : vector<1x4xf32> to vector<4x4xf32>
    %29 = arith.divf %25, %28 : vector<4x4xf32>
    %cst_15 = arith.constant dense<0xFF800000> : vector<4xf32>
    %30 = vector.multi_reduction <maximumf>, %20, %cst_15 [1] : vector<4x4xf32> to vector<4xf32>
    %31 = vector.shape_cast %30 : vector<4xf32> to vector<4x1xf32>
    %32 = vector.broadcast %31 : vector<4x1xf32> to vector<4x4xf32>
    %33 = arith.subf %20, %32 : vector<4x4xf32>
    %34 = math.exp %33 : vector<4x4xf32>
    %cst_16 = arith.constant dense<0.000000e+00> : vector<4xf32>
    %35 = vector.multi_reduction <add>, %34, %cst_16 [1] : vector<4x4xf32> to vector<4xf32>
    %36 = vector.shape_cast %35 : vector<4xf32> to vector<4x1xf32>
    %37 = vector.broadcast %36 : vector<4x1xf32> to vector<4x4xf32>
    %38 = arith.divf %34, %37 : vector<4x4xf32>
    %c0_17 = arith.constant 0 : index
    %c0_18 = arith.constant 0 : index
    %39 = vector.load %arg5[%c0_17, %c0_18] : memref<4x8xf32, #tpu.memory_space<vmem>>, vector<4x8xf32>
    %40 = vector.extract_strided_slice %39 {offsets = [0, 0], sizes = [4, 4], strides = [1, 1]} : vector<4x8xf32> to vector<4x4xf32>
    %cst_19 = arith.constant dense<0.000000e+00> : vector<4x4xf32>
    %41 = tpu.matmul %40, %29, %cst_19 {dimension_numbers = #tpu.dot_dimension_numbers<[1], [0], [0], [1], [0, 0, 1, 1], [], []>} : vector<4x4xf32>, vector<4x4xf32>, vector<4x4xf32> -> vector<4x4xf32>
    %42 = vector.extract_strided_slice %39 {offsets = [0, 4], sizes = [4, 4], strides = [1, 1]} : vector<4x8xf32> to vector<4x4xf32>
    %cst_20 = arith.constant dense<0.000000e+00> : vector<4x4xf32>
    %43 = tpu.matmul %42, %38, %cst_20 {dimension_numbers = #tpu.dot_dimension_numbers<[1], [1], [0], [0], [0, 0, 1, 0], [], []>} : vector<4x4xf32>, vector<4x4xf32>, vector<4x4xf32> -> vector<4x4xf32>
    %cst_21 = arith.constant dense<0.000000e+00> : vector<4x256xf32>
    %44 = tpu.matmul %41, %19, %cst_21 {dimension_numbers = #tpu.dot_dimension_numbers<[1], [0], [0], [1], [0, 0, 1, 1], [], []>} : vector<4x4xf32>, vector<4x256xf32>, vector<4x256xf32> -> vector<4x256xf32>
    %cst_22 = arith.constant dense<0.000000e+00> : vector<4x256xf32>
    %45 = tpu.matmul %43, %17, %cst_22 {dimension_numbers = #tpu.dot_dimension_numbers<[1], [0], [0], [1], [0, 0, 1, 1], [], []>} : vector<4x4xf32>, vector<4x256xf32>, vector<4x256xf32> -> vector<4x256xf32>
    %46 = arith.addf %44, %45 : vector<4x256xf32>
    %47 = vector.broadcast %7 : vector<4x1xf32> to vector<4x256xf32>
    %48 = arith.addf %46, %47 : vector<4x256xf32>
    %c0_23 = arith.constant 0 : index
    %c0_24 = arith.constant 0 : index
    %c0_25 = arith.constant 0 : index
    %49 = vector.load %arg7[%c0_23, %c0_24, %c0_25] : memref<1x4x256xf32, #tpu.memory_space<vmem>>, vector<1x4x256xf32>
    %50 = vector.shape_cast %49 : vector<1x4x256xf32> to vector<4x256xf32>
    %51 = vector.shape_cast %48 : vector<4x256xf32> to vector<1x4x256xf32>
    tpu.vector_store %arg7[%c0_23, %c0_24, %c0_25], %51 {strides = array<i32>} : memref<1x4x256xf32, #tpu.memory_space<vmem>>, vector<1x4x256xf32>,
    return
  }
  func.func @transform_0(%arg0: i32) -> (i32, i32, i32) {
    %c0_i32 = arith.constant 0 : i32
    %c0_i32_0 = arith.constant 0 : i32
    %c0_i32_1 = arith.constant 0 : i32
    return %arg0, %c0_i32, %c0_i32_0 : i32, i32, i32
  }
  func.func @transform_1(%arg0: i32) -> (i32, i32, i32) {
    %c0_i32 = arith.constant 0 : i32
    %c0_i32_0 = arith.constant 0 : i32
    %c0_i32_1 = arith.constant 0 : i32
    return %arg0, %c0_i32, %c0_i32_0 : i32, i32, i32
  }
  func.func @transform_2(%arg0: i32) -> (i32, i32) {
    %c0_i32 = arith.constant 0 : i32
    %c0_i32_0 = arith.constant 0 : i32
    %c0_i32_1 = arith.constant 0 : i32
    return %c0_i32, %c0_i32_0 : i32, i32
  }
  func.func @transform_3(%arg0: i32) -> (i32, i32) {
    %c0_i32 = arith.constant 0 : i32
    %c0_i32_0 = arith.constant 0 : i32
    %c0_i32_1 = arith.constant 0 : i32
    return %c0_i32, %c0_i32_0 : i32, i32
  }
  func.func @transform_4(%arg0: i32) -> (i32, i32) {
    %c0_i32 = arith.constant 0 : i32
    %c0_i32_0 = arith.constant 0 : i32
    %c0_i32_1 = arith.constant 0 : i32
    return %c0_i32, %c0_i32_0 : i32, i32
  }
  func.func @transform_5(%arg0: i32) -> (i32, i32) {
    %c0_i32 = arith.constant 0 : i32
    %c0_i32_0 = arith.constant 0 : i32
    %c0_i32_1 = arith.constant 0 : i32
    return %c0_i32, %c0_i32_0 : i32, i32
  }
  func.func @transform_6(%arg0: i32) -> (i32, i32, i32) {
    %c0_i32 = arith.constant 0 : i32
    %c0_i32_0 = arith.constant 0 : i32
    %c0_i32_1 = arith.constant 0 : i32
    return %arg0, %c0_i32, %c0_i32_0 : i32, i32, i32
  }
}

</mosaic_0001>

<bundles_post_ra>
// kernel: tpu_custom_call.1
= control target key start
LH: loop header
LB: loop body
LE: loop exit
PB: predicated region body
PF: predicated region fallthrough
CT: control target
= control target key end

     0   :  { %11 = vsyncpa [#allocation3], 0  ;;  %s1033_s0 = inlined_call_operand.vmem [shape: bf16[2,4,256], index: 0, kind: input, shape index: {}]   ;;  %s1034_s1 = inlined_call_operand.vmem [shape: bf16[2,4,256], index: 1, kind: input, shape index: {}]   ;;  %s1035_s2 = inlined_call_operand.vmem [shape: bf16[8,4], index: 2, kind: input, shape index: {}]   ;;  %s1036_s3 = inlined_call_operand.vmem [shape: bf16[8,4], index: 3, kind: input, shape index: {}]   ;;  %s1037_s4 = inlined_call_operand.vmem [shape: f32[4,8], index: 4, kind: input, shape index: {}]   ;;  %s1038_s5 = inlined_call_operand.vmem [shape: f32[20,1], index: 5, kind: input, shape index: {}]   ;;  %s1039_s6 = inlined_call_operand.hbm [shape: f32[2,4,256], index: 6, kind: output, shape index: {}]  }
   0x1   :  { %13 = vsyncpa [#allocation3 + $0x1], 0  ;;  %s903_s21 = smov 0   ;;  %s905_s22 = smov 0  }
   0x2   :  { %s907_s23 = smov 0   ;;  %s909_s24 = smov 0  }
   0x3 LB: > { %s924_s25 = sadd.s32 4294967295, %s864_s24   ;;  %s718_s26 = sadd.s32 4294967294, %s864_s24   ;;  %s864_s24 = sphi %s909_s24, %s1045_s24   ;;  %s860_s23 = sphi %s907_s23, %s1044_s23   ;;  %s856_s22 = sphi %s905_s22, %s1043_s22   ;;  %s852_s21 = sphi %s903_s21, %s1042_s21  }
   0x4   : > { %s928_s27 = sadd.s32 1, %s864_s24   ;;  %s162_s28 = sadd.s32 1, %s860_s23 }
   0x5   : > { %s159_s29 = ssub.s32 %s864_s24, %s928_s27  ;;  %p172_p0 = scmp.ne.s32.totalorder %s860_s23, %s856_s22 }
   0x6   : > { %p160_p1 = scmp.eq.s32.totalorder %s159_s29, 0  ;;  %p173_p2 = scmp.eq.s32.totalorder %s924_s25, 1 }
   0x7   : > { %p178_p3 = scmp.ne.s32.totalorder %s856_s22, %s852_s21  ;;  %p179_p4 = scmp.eq.s32.totalorder %s718_s26, 1 }
   0x8   : > { %s939_s30 = scalar_select %p160_p1, %s860_s23, %s162_s28  }
   0x9   : > { %p941_p5 = por %p173_p2, %p172_p0  ;;  %p945_p6 = por %p179_p4, %p178_p3 }
   0xa   : > { %p721_p7 = scmp.ge.s32.totalorder %s864_s24, 1  ;;  %p225_p8 = scmp.lt.s32.totalorder %s864_s24, 3 }
   0xc   : > { %p226_p9 = pnand %p721_p7, %p225_p8 }
   0xd   : > { %p260_p10 = scmp.lt.s32.totalorder (!%p226_p9), %s924_s25, 1  ;;  %s750_s17 = sshll.u32 (!%p226_p9), %s924_s25, 3 }
   0xe   : > { %229 = sbr.rel (%p226_p9) target bundleno = 844 (0x34c), region = 44  ;;  %s822_s13 = scalar_lea.hbm (!%p226_p9), %s1039_s6, 16 }
  0x13   : > { %v866_v0 = vmov 0   ;;  %v274_v1 = vld [vmem:[%s1038_s5 + $0x8] sm:$0xff]  ;;  %s261_s11 = scalar_select %p260_p10, %s924_s25, 1  ;;  %v273_v3 = vld [vmem:[%s1038_s5] sm:$0xff]  ;;  %vm290_vm0 = vcmask 1041408   ;;  %vm286_vm1 = vcmask 31744  }
  0x14   : > { %792 = vset.pattern.permute.xlu0 %v866_v0  ;;  %793 = vset.pattern.permute.xlu2 %v866_v0  ;;  %v276_v9 = vld [vmem:[%s1035_s2] sm:$0xf]  ;;  %vm464_vm2 = vcmask 1043456   ;;  %vm404_vm3 = vcmask 27648  }
  0x15   : > { %324 = vperm.xlu0 %792, %v274_v1   ;;  %s748_s12 = sshll.u32 %s261_s11, 2  ;;  %v321_v14 = vld [vmem:[%s1036_s3] sm:$0xf] }
  0x16   : > { %s264_s15 = scalar_lea.vmem %s1033_s0, %s748_s12  ;;  %s269_s20 = scalar_lea.vmem %s1034_s1, %s748_s12  ;;  %v460_v63 = vld [vmem:[%s1037_s4] sm:$0xf] }
  0x17   : > { %v271_v2 = vld [vmem:[%s264_s15] sm:$0xf]  ;;  %s867_s12 = smov 124   ;;  %s257_s15 = sand.u32 1, %s856_s22  }
  0x18   : > { %283 = vst [vmem:[#allocation1] ss:$4 sm:$0xff] %v271_v2  ;;  %v272_v4 = vld [vmem:[%s269_s20] sm:$0xf]  ;;  %488 = vrot.lane.b32.xlu2 %v460_v63, %s867_s12  ;;  %s722_s16 = sshll.u32 %s257_s15, 3  ;;  %s642_s20 = scalar_lea.hbm %s1039_s6, %s750_s17 }
  0x19   : > { %s259_s26 = scalar_lea.vmem [#allocation2], %s722_s16  ;;  %s646_s29 = sshll.u32 %s642_s20, 4  ;;  %s647_s29 = int_to_ptr.hbm [resolvable:$true] %s646_s29 }
  0x1a   : > { %s644_s28 = sshll.u32 %s259_s26, 4  ;;  %s631_s25 = scalar_lea.sflag [#allocation3], %s257_s15  ;;  %s645_s28 = int_to_ptr.vmem [resolvable:$true] %s644_s28 }
  0x1b   : > { %s816_s9 = sshra.s32 %s647_s29, 4  ;;  %s817_s9 = int_to_ptr.hbm [resolvable:$true] %s816_s9 }
  0x1c   : > { %s818_s10 = scalar_lea.hbm %s817_s9, 8  ;;  %p823_p0 = scmp.lt.s32.totalorder %s817_s9, %s1039_s6 }
  0x1d   : > { %279 = vperm.xlu0 %792, %v273_v3   ;;  %p819_p11 = scmp.ne.s32.totalorder %s817_s9, %s818_s10  ;;  %p824_p1 = scmp.lt.s32.totalorder %s822_s13, %s818_s10 }
  0x1f   : > { %v284_v5 = vld.sshfl [vmem:[#allocation1] sm:$0xff pattern:$0x73625140]  ;;  %v285_v6 = vld.sshfl [vmem:[#allocation1 + $0x8] sm:$0xff pattern:$0x73625140]  ;;  %p820_p12 = pnand %p819_p11, %p941_p5  ;;  %p825_p2 = por %p824_p1, %p823_p0 }
  0x20   : > { %328 = vst [vmem:[#allocation1] ss:$4 sm:$0xff] %v272_v4  ;;  %v291_v7 = vsel %vm290_vm0, %v284_v5, 0  ;;  %v293_v8 = vsel %vm290_vm0, %v285_v6, 0 }
  0x21   : > { %302 = vmatpush.bf16.msra.mxu0 %v291_v7  ;;  %315 = vmatpush.bf16.msra.mxu1 %v293_v8  ;;  %p821_p13 = pneg %p820_p12 }
  0x23   : > { %p826_p3 = pnand %p825_p2, %p821_p13 }
  0x24   : > { %727 = vmatmul.msk.bf16.vlgmr.msra.gmra.mxu0 %vm286_vm1, %v276_v9  ;;  %728 = vmatmul.msk.bf16.vlgmr.msra.gmra.mxu1 %vm286_vm1, %v276_v9 }
  0x27   : > { %v329_v10 = vld.sshfl [vmem:[#allocation1] sm:$0xff pattern:$0x73625140]  ;;  %v330_v11 = vld.sshfl [vmem:[#allocation1 + $0x8] sm:$0xff pattern:$0x73625140] }
  0x28   : > { %v334_v12 = vsel %vm290_vm0, %v329_v10, 0  ;;  %v336_v13 = vsel %vm290_vm0, %v330_v11, 0 }
  0x29   : > { %345 = vmatpush.bf16.msra.mxu2 %v334_v12  ;;  %358 = vmatpush.bf16.msra.mxu3 %v336_v13 }
  0x2c   : > { %729 = vmatmul.msk.bf16.vlgmr.msra.gmra.mxu2 %vm286_vm1, %v321_v14  ;;  %730 = vmatmul.msk.bf16.vlgmr.msra.gmra.mxu3 %vm286_vm1, %v321_v14 }
  0x87   : > { %v325_v15 = vpop.permute.xlu0 %324 }
  0x8f   : > { %v280_v20 = vpop.permute.xlu0 %279 }
  0xa1   : > { %v304_v16 = vpop.f32.mrf.mxu0  ;;  %v317_v17 = vpop.f32.mrf.mxu1 }
  0xa2   : > { %v305_v21 = vadd.f32 %v304_v16, %v280_v20  ;;  %v318_v22 = vadd.f32 %v317_v17, %v280_v20  ;;  %v275_v20 = vld [vmem:[%s1038_s5 + $0x10] sm:$0xf] }
  0xa3   : > { %619 = vperm.xlu2 %793, %v275_v20  }
  0xa4   : > { %v517_v27 = vrot.slane %v305_v21, 4  ;;  %v518_v28 = vrot.slane %v318_v22, 4 }
  0xa9   : > { %v306_v18 = vpop.f32.mrf.mxu0  ;;  %v319_v19 = vpop.f32.mrf.mxu1 }
  0xaa   : > { %v489_v19 = vpop.permute.xlu2 %488 }
  0xaf   : > { %v347_v23 = vpop.f32.mrf.mxu2  ;;  %v360_v24 = vpop.f32.mrf.mxu3 }
  0xb0   : > { %v348_v25 = vadd.f32 %v347_v23, %v325_v15  ;;  %v975_v26 = vadd.f32 %v360_v24, %v325_v15 }
  0xb2   : > { %379 = vmatpush.xpose.msrb.mxu0 %v348_v25  ;;  %399 = vmatpush.xpose.msrb.mxu1 %v975_v26  ;;  %v568_v62 = vrot.slane %v348_v25, 4  ;;  %v569_v18 = vrot.slane %v975_v26, 4 }
  0xb5   : > { %380 = vmatmul.f32.vlgmr.msrb.gmra.mxu0 %v305_v21  ;;  %400 = vmatmul.f32.vlgmr.msrb.gmra.mxu1 %v318_v22 }
  0xb6   : > { %735 = vmatpush.msk.msra.mxu0 %vm464_vm2, %v517_v27  ;;  %737 = vmatpush.msk.msra.mxu1 %vm464_vm2, %v518_v28 }
  0xb7   : > { %v349_v29 = vpop.f32.mrf.mxu2  ;;  %v362_v30 = vpop.f32.mrf.mxu3 }
  0xfd   : > { %v620_v24 = vpop.permute.xlu2 %619 }
 0x132   : > { %v381_v31 = vpop.f32.mrf.mxu0  ;;  %v401_v32 = vpop.f32.mrf.mxu1 }
 0x133   : > { %v402_v33 = vadd.f32 %v401_v32, %v381_v31 }
 0x135   : > { %v405_v34 = vsel %vm404_vm3, %v402_v33, -inf }
 0x136   : > { %437 = vmax.xlane.f32.xlu1 %v405_v34  ;;  %v406_v35 = vrot.slane %v405_v34, 4 }
 0x138   : > { %v407_v36 = vmax.f32 %v405_v34, %v406_v35 }
 0x13a   : > { %v408_v37 = vrot.slane %v407_v36, 2 }
 0x13c   : > { %v409_v38 = vmax.f32 %v407_v36, %v408_v37 }
 0x13e   : > { %v410_v39 = vrot.slane %v409_v38, 1 }
 0x140   : > { %v411_v40 = vmax.f32 %v409_v38, %v410_v39 }
 0x142   : > { %v412_v41 = vsub.f32 %v402_v33, %v411_v40 }
 0x144   : > { %v413_v42 = vmul.f32 1.442695, %v412_v41 }
 0x146   : > { %794 = vpow2.f32 %v413_v42 }
 0x14c   : > { %v795_v43 = vpop.eup %794 }
 0x14d   : > { %v415_v44 = vsel %vm404_vm3, %v795_v43, 0.0 }
 0x14e   : > { %v416_v45 = vrot.slane %v415_v44, 4 }
 0x150   : > { %v417_v46 = vadd.f32 %v416_v45, %v415_v44 }
 0x152   : > { %v418_v47 = vrot.slane %v417_v46, 2 }
 0x154   : > { %v419_v48 = vadd.f32 %v418_v47, %v417_v46 }
 0x156   : > { %v420_v49 = vrot.slane %v419_v48, 1 }
 0x158   : > { %v421_v50 = vadd.f32 %v420_v49, %v419_v48 }
 0x15a   : > { %796 = vrcp.f32 %v421_v50  ;;  %v433_v54 = vand.u32 2147483648, %v421_v50  ;;  %v431_v56 = vand.u32 2147483647, %v421_v50  ;;  %vm427_vm5 = vweird.f32 %v421_v50 }
 0x15c   : > { %v434_v58 = vor.u32 1.1754944e-38, %v433_v54  ;;  %vm432_vm7 = vcmp.eq.f32.partialorder %v431_v56, 8.507059e+37 }
 0x160   : > { %v797_v51 = vpop.eup %796 }
 0x161   : > { %v423_v52 = vmul.f32 %v797_v51, %v421_v50  ;;  %vm428_vm4 = vweird.f32 %v797_v51 }
 0x162   : > { %vm429_vm6 = vmor %vm427_vm5, %vm428_vm4 }
 0x163   : > { %v424_v53 = vsub.f32 1.0, %v423_v52 }
 0x165   : > { %v425_v55 = vmul.f32 %v797_v51, %v424_v53 }
 0x167   : > { %v426_v57 = vadd.f32 %v797_v51, %v425_v55 }
 0x169   : > { %v430_v59 = vsel %vm429_vm6, %v797_v51, %v426_v57 }
 0x16a   : > { %v435_v60 = vsel %vm432_vm7, %v434_v58, %v430_v59 }
 0x16b   : > { %v436_v61 = vmul.f32 %v795_v43, %v435_v60 }
 0x16d   : > { %731 = vmatpush.msk.msrb.mxu2 %vm464_vm2, %v436_v61 }
 0x16e   : > { %732 = vmatmul.msk.f32.vlgmr.msrb.gmra.mxu2 %vm286_vm1, %v460_v63 }
 0x16f   : > { %739 = vmatpush.msk.msra.mxu2 %vm464_vm2, %v568_v62 }
 0x1a9   : > { %v438_v0 = vpop.xlane.xlu1 %437 }
 0x1aa   : > { %v439_v1 = vsub.f32 %v402_v33, %v438_v0 }
 0x1ac   : > { %v440_v2 = vmul.f32 1.442695, %v439_v1 }
 0x1ae   : > { %798 = vpow2.f32 %v440_v2 }
 0x1b4   : > { %v799_v3 = vpop.eup %798 }
 0x1b5   : > { %v442_v4 = vsel %vm404_vm3, %v799_v3, 0.0 }
 0x1b6   : > { %443 = vadd.xlane.f32.xlu1 %v442_v4 }
 0x1f1   : > { %v485_v5 = vpop.f32.mrf.mxu2 }
 0x1f2   : > { %740 = vmatmul.msk.f32.vlgmr.msra.gmra.mxu2 %vm286_vm1, %v485_v5 }
 0x229   : > { %v444_v6 = vpop.xlane.xlu1 %443 }
 0x22a   : > { %800 = vrcp.f32 %v444_v6  ;;  %v456_v10 = vand.u32 2147483648, %v444_v6  ;;  %v454_v12 = vand.u32 2147483647, %v444_v6  ;;  %vm450_vm9 = vweird.f32 %v444_v6 }
 0x22c   : > { %v457_v14 = vor.u32 1.1754944e-38, %v456_v10  ;;  %vm455_vm11 = vcmp.eq.f32.partialorder %v454_v12, 8.507059e+37 }
 0x230   : > { %v801_v7 = vpop.eup %800 }
 0x231   : > { %v446_v8 = vmul.f32 %v801_v7, %v444_v6  ;;  %vm451_vm8 = vweird.f32 %v801_v7 }
 0x232   : > { %vm452_vm10 = vmor %vm450_vm9, %vm451_vm8 }
 0x233   : > { %v447_v9 = vsub.f32 1.0, %v446_v8 }
 0x235   : > { %v448_v11 = vmul.f32 %v801_v7, %v447_v9 }
 0x237   : > { %v449_v13 = vadd.f32 %v801_v7, %v448_v11 }
 0x239   : > { %v453_v15 = vsel %vm452_vm10, %v801_v7, %v449_v13 }
 0x23a   : > { %v458_v16 = vsel %vm455_vm11, %v457_v14, %v453_v15 }
 0x23b   : > { %v459_v17 = vmul.f32 %v799_v3, %v458_v16 }
 0x23d   : > { %733 = vmatpush.xpose.msk.msrb.mxu3 %vm286_vm1, %v459_v17 }
 0x240   : > { %734 = vmatmul.msk.f32.vlgmr.msrb.gmra.mxu3 %vm286_vm1, %v489_v19 }
 0x241   : > { %741 = vmatpush.msk.msra.mxu3 %vm464_vm2, %v569_v18 }
 0x248   : > { %742 = vmatmul.msk.f32.vlgmr.msra.gmra.mxu3 %vm286_vm1, %v485_v5 }
 0x275   : > { %v594_v23 = vpop.f32.mrf.mxu2 }
 0x2c3   : > { %v512_v21 = vpop.f32.mrf.mxu3 }
 0x2c4   : > { %738 = vmatmul.msk.f32.vlgmr.msra.gmra.mxu1 %vm286_vm1, %v512_v21  ;;  %736 = vmatmul.msk.f32.vlgmr.msra.gmra.mxu0 %vm286_vm1, %v512_v21 }
 0x2cb   : > { %v614_v22 = vpop.f32.mrf.mxu3 }
 0x341   : > { %v563_v25 = vpop.f32.mrf.mxu1  ;;  %v543_v26 = vpop.f32.mrf.mxu0 }
 0x342   : > { %v615_v27 = vadd.f32 %v614_v22, %v563_v25  ;;  %v595_v28 = vadd.f32 %v594_v23, %v543_v26 }
 0x344   : > { %v623_v29 = vadd.f32 %v620_v24, %v615_v27  ;;  %v622_v31 = vadd.f32 %v620_v24, %v595_v28 }
 0x346   : > { %v626_v30 = vrot.slane %v623_v29, 4 }
 0x348   : > { %v627_v32 = vsel %vm464_vm2, %v622_v31, %v626_v30 }
 0x349   : > { %629 = vst [vmem:[%s259_s26] sm:$0xff] %v627_v32 }
 0x34a   : > { %829 = shalt.err (!%p826_p3)
}
 0x34b   : > { %751 = dma.vmem_to_hbm [thread:$0]  (%p941_p5), %s645_s28, 128, %s647_s29, %s631_s25  }
 0x34c PF: > { %p757_p4 = scmp.ge.s32.totalorder %s864_s24, 2  ;;  %s658_s15 = sand.u32 1, %s852_s21  }
 0x34d   : > { %s659_s17 = scalar_lea.sflag [#allocation3], %s658_s15 }
 0x34e   : > { %p754_p7 = pnand %p757_p4, %p945_p6 }
 0x350   : > { %p755_p8 = pneg %p754_p7 }
 0x352   : > { %847 = dma.done.wait (%p755_p8), %s659_s17, 128  }
 0x353   : > { %849 = vsyncadd (%p755_p8), %s659_s17, 4294967168  ;;  %p16_p9 = scmp.ge.s32.totalorder %s928_s27, 4   ;;  %s1042_s21 = smov %s856_s22 }
 0x354   : > { %s1043_s22 = smov %s860_s23  ;;  %s1044_s23 = smov %s939_s30 }
 0x355   : > { %s1045_s24 = smov %s928_s27  ;;  %18 = sbr.rel (!%p16_p9) target bundleno = 3 (0x3), region = 82 }
 0x35a   :  { %665 = vsyncpa [#allocation3], 1 }
 0x35b   :  { %667 = vsyncpa [#allocation3 + $0x1], 1 }

</bundles_post_ra>
